<compile_context>
chip_gen: v7x
topology: tpu7x:2x2x1
jax: 0.10.0
libtpu: 0.0.40
codegen_flags: <defaults>
</compile_context>

<pallas_src>
import jax
import jax.numpy as jnp
from jax.experimental import pallas as pl
from jax.experimental.pallas import tpu as pltpu


def _round_up(x, k):
    return (x + k - 1) // k * k


def channel_kernel(d_ref, st_ref, s_ref, w1_ref, b1_ref, w2_ref, b2_ref,
                   w3_ref, b3_ref, attw_ref, atts_ref, prob_ref):
    d = d_ref[...]                                        # [TN, Ds] bf16

    # --- attention: softmax(D @ S^T / T); temperature already folded into S^T
    scores = jnp.dot(d, st_ref[...],
                     preferred_element_type=jnp.float32)  # [TN, m] f32
    smax = jnp.max(scores, axis=1, keepdims=True)
    e = jnp.exp(scores - smax)
    # EUP approx reciprocal (rows sum to ~1); use exact divide for bit parity.
    att_w = e * pl.reciprocal(jnp.sum(e, axis=1, keepdims=True), approx=True)
    att_S = jnp.dot(att_w.astype(jnp.bfloat16), s_ref[...],
                    preferred_element_type=jnp.float32)   # [TN, Ds] f32

    attw_ref[...] = att_w.astype(attw_ref.dtype)          # bf16 diagnostic writeback
    atts_ref[...] = att_S

    # --- p_producer MLP (eval-mode dropout = identity) ------------------------
    # gating product in f32 (v5e has no bf16 VALU); single cast at the MXU edge
    gate = d.astype(jnp.float32) * att_S
    feat = jnp.concatenate(
        [d, att_S.astype(jnp.bfloat16), gate.astype(jnp.bfloat16)],
        axis=-1)                                          # [TN, 3*Ds] bf16

    h1 = jnp.dot(feat, w1_ref[...],
                 preferred_element_type=jnp.float32) + b1_ref[...]
    h1 = jnp.maximum(h1, 0.0).astype(jnp.bfloat16)        # [TN, 1024]

    h2 = jnp.dot(h1, w2_ref[...],
                 preferred_element_type=jnp.float32) + b2_ref[...]
    h2 = jnp.maximum(h2, 0.0)                             # [TN, 256] f32

    # final Linear(256, 1): VPU multiply + lane reduction (no N=1 MXU push)
    logits = jnp.sum(h2 * w3_ref[...], axis=-1, keepdims=True) + b3_ref[0]

    # numerically stable sigmoid (exp(-|x|) form), EUP approx reciprocal
    neg = logits < 0.0
    z = jnp.exp(jnp.where(neg, logits, -logits))
    r = pl.reciprocal(1.0 + z, approx=True)
    prob_ref[...] = jnp.where(neg, z * r, r)              # [TN, 1] f32


def channel_model_forward(D, S, params, temperature=1.0, tn_max=512):
    n, Ds = D.shape
    m, _ = S.shape
    w1, b1, w2, b2, w3, b3 = params

    # --- row tile: big tiles amortize per-step pipeline overhead; for large n
    # covered by one tile, split in two so v7x's 2 TCs both get work.
    tn = min(tn_max, _round_up(n, 8))
    num_tiles = pl.cdiv(n, tn)
    if num_tiles == 1 and n > 256:
        tn = _round_up(pl.cdiv(n, 2), 8)
        num_tiles = pl.cdiv(n, tn)
    n_pad = num_tiles * tn

    # D: cast to bf16 (MXU operand); pad rows only when needed.
    D_b = D.astype(jnp.bfloat16)
    if n_pad != n:
        D_b = jnp.pad(D_b, ((0, n_pad - n), (0, 0)))
    # S: one tiny per-call prep — bf16 copy for att_w @ S, and a pre-transposed
    # [Ds, m] copy with 1/temperature folded in for the scores matmul.
    S_b = S.astype(jnp.bfloat16)
    S_t = (S.T * (1.0 / temperature)).astype(jnp.bfloat16)

    tile_map = lambda i: (i, 0)   # noqa: E731  (pipelined per row tile)
    const_map = lambda i: (0, 0)  # noqa: E731  (VMEM-resident, never re-DMA'd)

    out_shapes = (
        jax.ShapeDtypeStruct((n_pad, m), jnp.bfloat16),   # att_weight (diagnostic)
        jax.ShapeDtypeStruct((n_pad, Ds), jnp.float32),   # att_S
        jax.ShapeDtypeStruct((n_pad, 1), jnp.float32),    # prob_vector
    )

    att_w, att_S, prob = pl.pallas_call(
        channel_kernel,
        out_shape=out_shapes,
        grid=(num_tiles,),
        in_specs=[
            pl.BlockSpec((tn, Ds), tile_map),                 # D tile (pipelined)
            pl.BlockSpec((Ds, m), const_map),                 # S^T / temperature
            pl.BlockSpec((m, Ds), const_map),                 # S
            pl.BlockSpec((3 * Ds, 1024), const_map),          # W1 bf16 (resident)
            pl.BlockSpec((1, 1024), const_map),               # b1
            pl.BlockSpec((1024, 256), const_map),             # W2 bf16 (resident)
            pl.BlockSpec((1, 256), const_map),                # b2
            pl.BlockSpec((1, 256), const_map),                # W3 row (VPU layer)
            pl.BlockSpec(memory_space=pltpu.MemorySpace.SMEM),  # b3 scalar
        ],
        out_specs=(
            pl.BlockSpec((tn, m), tile_map),
            pl.BlockSpec((tn, Ds), tile_map),
            pl.BlockSpec((tn, 1), tile_map),
        ),
        compiler_params=pltpu.CompilerParams(
            dimension_semantics=("parallel",),      # shard row tiles on v7x's 2 TCs
            vmem_limit_bytes=32 * 1024 * 1024,      # ~5 MiB working set @ TN=512
        ),
    )(D_b, S_t, S_b, w1, b1, w2, b2, w3, b3)

    prob_n = prob[:n]
    # log_prob reduced in the wrapper from prob (removes the per-row logterm
    # output and its lane-1 masked stores; padded rows never enter the sum).
    log_prob = jnp.sum(jnp.log(0.5 + prob_n))
    addition = {
        'prob_vector': prob_n,
        'att_weight': att_w[:n],
        'att_S': att_S[:n],
    }
    return log_prob, addition


def init_params(key, se_dim):
    """Deterministic init matching reset_parameters():
    kaiming_normal_ (fan_in, gain=sqrt(2)) for weights, zeros for biases.
    W1/W2 stored as [in, out] and pre-cast to bf16 once (no per-call recast);
    W3 kept as its natural [1, 256] f32 row; b3 as a (1,) SMEM scalar."""
    k1, k2, k3 = jax.random.split(key, 3)

    def kaiming(k, shape, fan_in):
        std = (2.0 / fan_in) ** 0.5
        return std * jax.random.normal(k, shape, dtype=jnp.float32)

    w1 = kaiming(k1, (3 * se_dim, 1024), 3 * se_dim).astype(jnp.bfloat16)
    b1 = jnp.zeros((1, 1024), jnp.float32)

    w2 = kaiming(k2, (1024, 256), 1024).astype(jnp.bfloat16)
    b2 = jnp.zeros((1, 256), jnp.float32)

    w3 = kaiming(k3, (1, 256), 256)        # torch Linear(256,1).weight shape
    b3 = jnp.zeros((1,), jnp.float32)

    return (w1, b1, w2, b2, w3, b3)


if __name__ == "__main__":
    se_dim = 32      # Ds
    n, m = 8, 8      # sentences in document / summary

    key = jax.random.PRNGKey(0)
    kD, kS, kP = jax.random.split(key, 3)
    D = jax.random.normal(kD, (n, se_dim), dtype=jnp.float32)
    S = jax.random.normal(kS, (m, se_dim), dtype=jnp.float32)
    params = init_params(kP, se_dim)

    log_prob, addition = channel_model_forward(D, S, params)
    jax.block_until_ready((log_prob, addition))

    assert addition['prob_vector'].shape == (n, 1)
    assert addition['att_weight'].shape == (n, m)
    assert addition['att_S'].shape == (n, se_dim)
    assert log_prob.shape == ()
    assert bool(jnp.isfinite(log_prob))
    print("KERNEL_OK")
</pallas_src>

<mosaic_0001>
module attributes {stable_mosaic.version = 11 : i64} {
  func.func @channel_kernel(%arg0: i32, %arg1: memref<8x32xbf16, #tpu.memory_space<vmem>>, %arg2: memref<32x8xbf16, #tpu.memory_space<vmem>>, %arg3: memref<8x32xbf16, #tpu.memory_space<vmem>>, %arg4: memref<96x1024xbf16, #tpu.memory_space<vmem>>, %arg5: memref<1x1024xf32, #tpu.memory_space<vmem>>, %arg6: memref<1024x256xbf16, #tpu.memory_space<vmem>>, %arg7: memref<1x256xf32, #tpu.memory_space<vmem>>, %arg8: memref<1x256xf32, #tpu.memory_space<vmem>>, %arg9: memref<1xf32, #tpu.memory_space<smem>>, %arg10: memref<8x8xbf16, #tpu.memory_space<vmem>>, %arg11: memref<8x32xf32, #tpu.memory_space<vmem>>, %arg12: memref<8x1xf32, #tpu.memory_space<vmem>>) attributes {dimension_semantics = [#tpu.dimension_semantics<parallel>], iteration_bounds = array<i64: 1>, scalar_prefetch = 0 : i64, scratch_operands = 0 : i64, tpu.core_type = #tpu.core_type<tc>, window_params = [{transform_indices = @transform_0, window_bounds = array<i64: 8, 32>}, {pipeline_mode = #tpu.pipeline_mode<synchronous>, transform_indices = @transform_1, window_bounds = array<i64: 32, 8>}, {pipeline_mode = #tpu.pipeline_mode<synchronous>, transform_indices = @transform_2, window_bounds = array<i64: 8, 32>}, {pipeline_mode = #tpu.pipeline_mode<synchronous>, transform_indices = @transform_3, window_bounds = array<i64: 96, 1024>}, {pipeline_mode = #tpu.pipeline_mode<synchronous>, transform_indices = @transform_4, window_bounds = array<i64: 1, 1024>}, {pipeline_mode = #tpu.pipeline_mode<synchronous>, transform_indices = @transform_5, window_bounds = array<i64: 1024, 256>}, {pipeline_mode = #tpu.pipeline_mode<synchronous>, transform_indices = @transform_6, window_bounds = array<i64: 1, 256>}, {pipeline_mode = #tpu.pipeline_mode<synchronous>, transform_indices = @transform_7, window_bounds = array<i64: 1, 256>}, {transform_indices = @transform_8, window_bounds = array<i64: 1>}, {transform_indices = @transform_9, window_bounds = array<i64: 8, 8>}, {transform_indices = @transform_10, window_bounds = array<i64: 8, 32>}, {transform_indices = @transform_11, window_bounds = array<i64: 8, 1>}]} {
    %c0 = arith.constant 0 : index
    %c0_0 = arith.constant 0 : index
    %0 = vector.load %arg1[%c0, %c0_0] : memref<8x32xbf16, #tpu.memory_space<vmem>>, vector<8x32xbf16>
    %c0_1 = arith.constant 0 : index
    %c0_2 = arith.constant 0 : index
    %1 = vector.load %arg2[%c0_1, %c0_2] : memref<32x8xbf16, #tpu.memory_space<vmem>>, vector<32x8xbf16>
    %cst = arith.constant dense<0.000000e+00> : vector<8x8xf32>
    %2 = tpu.matmul %0, %1, %cst {dimension_numbers = #tpu.dot_dimension_numbers<[1], [0], [0], [1], [0, 0, 1, 1], [], []>} : vector<8x32xbf16>, vector<32x8xbf16>, vector<8x8xf32> -> vector<8x8xf32>
    %cst_3 = arith.constant dense<0xFF800000> : vector<8xf32>
    %3 = vector.multi_reduction <maximumf>, %2, %cst_3 [1] : vector<8x8xf32> to vector<8xf32>
    %4 = vector.shape_cast %3 : vector<8xf32> to vector<8x1xf32>
    %5 = vector.broadcast %4 : vector<8x1xf32> to vector<8x8xf32>
    %6 = arith.subf %2, %5 : vector<8x8xf32>
    %7 = math.exp %6 : vector<8x8xf32>
    %cst_4 = arith.constant dense<0.000000e+00> : vector<8xf32>
    %8 = vector.multi_reduction <add>, %7, %cst_4 [1] : vector<8x8xf32> to vector<8xf32>
    %9 = vector.shape_cast %8 : vector<8xf32> to vector<8x1xf32>
    %10 = tpu.reciprocal %9 {approx = true} : vector<8x1xf32> -> vector<8x1xf32>
    %11 = vector.broadcast %10 : vector<8x1xf32> to vector<8x8xf32>
    %12 = arith.mulf %7, %11 : vector<8x8xf32>
    %13 = arith.truncf %12 : vector<8x8xf32> to vector<8x8xbf16>
    %c0_5 = arith.constant 0 : index
    %c0_6 = arith.constant 0 : index
    %14 = vector.load %arg3[%c0_5, %c0_6] : memref<8x32xbf16, #tpu.memory_space<vmem>>, vector<8x32xbf16>
    %cst_7 = arith.constant dense<0.000000e+00> : vector<8x32xf32>
    %15 = tpu.matmul %13, %14, %cst_7 {dimension_numbers = #tpu.dot_dimension_numbers<[1], [0], [0], [1], [0, 0, 1, 1], [], []>} : vector<8x8xbf16>, vector<8x32xbf16>, vector<8x32xf32> -> vector<8x32xf32>
    %16 = arith.truncf %12 : vector<8x8xf32> to vector<8x8xbf16>
    %c0_8 = arith.constant 0 : index
    %c0_9 = arith.constant 0 : index
    %17 = vector.load %arg10[%c0_8, %c0_9] : memref<8x8xbf16, #tpu.memory_space<vmem>>, vector<8x8xbf16>
    tpu.vector_store %arg10[%c0_8, %c0_9], %16 {strides = array<i32>} : memref<8x8xbf16, #tpu.memory_space<vmem>>, vector<8x8xbf16>,
    %c0_10 = arith.constant 0 : index
    %c0_11 = arith.constant 0 : index
    %18 = vector.load %arg11[%c0_10, %c0_11] : memref<8x32xf32, #tpu.memory_space<vmem>>, vector<8x32xf32>
    tpu.vector_store %arg11[%c0_10, %c0_11], %15 {strides = array<i32>} : memref<8x32xf32, #tpu.memory_space<vmem>>, vector<8x32xf32>,
    %19 = arith.extf %0 : vector<8x32xbf16> to vector<8x32xf32>
    %20 = arith.mulf %19, %15 : vector<8x32xf32>
    %21 = arith.truncf %15 : vector<8x32xf32> to vector<8x32xbf16>
    %22 = arith.truncf %20 : vector<8x32xf32> to vector<8x32xbf16>
    %23 = tpu.concatenate %0, %21, %22 in 1 : vector<8x32xbf16>, vector<8x32xbf16>, vector<8x32xbf16> -> vector<8x96xbf16>
    %c0_12 = arith.constant 0 : index
    %c0_13 = arith.constant 0 : index
    %24 = vector.load %arg4[%c0_12, %c0_13] : memref<96x1024xbf16, #tpu.memory_space<vmem>>, vector<96x1024xbf16>
    %cst_14 = arith.constant dense<0.000000e+00> : vector<8x1024xf32>
    %25 = tpu.matmul %23, %24, %cst_14 {dimension_numbers = #tpu.dot_dimension_numbers<[1], [0], [0], [1], [0, 0, 1, 1], [], []>} : vector<8x96xbf16>, vector<96x1024xbf16>, vector<8x1024xf32> -> vector<8x1024xf32>
    %c0_15 = arith.constant 0 : index
    %c0_16 = arith.constant 0 : index
    %26 = vector.load %arg5[%c0_15, %c0_16] : memref<1x1024xf32, #tpu.memory_space<vmem>>, vector<1x1024xf32>
    %27 = vector.broadcast %26 : vector<1x1024xf32> to vector<8x1024xf32>
    %28 = arith.addf %25, %27 : vector<8x1024xf32>
    %cst_17 = arith.constant 0.000000e+00 : f32
    %29 = vector.broadcast %cst_17 : f32 to vector<8x1024xf32>
    %30 = arith.maximumf %28, %29 : vector<8x1024xf32>
    %31 = arith.truncf %30 : vector<8x1024xf32> to vector<8x1024xbf16>
    %c0_18 = arith.constant 0 : index
    %c0_19 = arith.constant 0 : index
    %32 = vector.load %arg6[%c0_18, %c0_19] : memref<1024x256xbf16, #tpu.memory_space<vmem>>, vector<1024x256xbf16>
    %cst_20 = arith.constant dense<0.000000e+00> : vector<8x256xf32>
    %33 = tpu.matmul %31, %32, %cst_20 {dimension_numbers = #tpu.dot_dimension_numbers<[1], [0], [0], [1], [0, 0, 1, 1], [], []>} : vector<8x1024xbf16>, vector<1024x256xbf16>, vector<8x256xf32> -> vector<8x256xf32>
    %c0_21 = arith.constant 0 : index
    %c0_22 = arith.constant 0 : index
    %34 = vector.load %arg7[%c0_21, %c0_22] : memref<1x256xf32, #tpu.memory_space<vmem>>, vector<1x256xf32>
    %35 = vector.broadcast %34 : vector<1x256xf32> to vector<8x256xf32>
    %36 = arith.addf %33, %35 : vector<8x256xf32>
    %cst_23 = arith.constant 0.000000e+00 : f32
    %37 = vector.broadcast %cst_23 : f32 to vector<8x256xf32>
    %38 = arith.maximumf %36, %37 : vector<8x256xf32>
    %c0_24 = arith.constant 0 : index
    %c0_25 = arith.constant 0 : index
    %39 = vector.load %arg8[%c0_24, %c0_25] : memref<1x256xf32, #tpu.memory_space<vmem>>, vector<1x256xf32>
    %40 = vector.broadcast %39 : vector<1x256xf32> to vector<8x256xf32>
    %41 = arith.mulf %38, %40 : vector<8x256xf32>
    %cst_26 = arith.constant dense<0.000000e+00> : vector<8xf32>
    %42 = vector.multi_reduction <add>, %41, %cst_26 [1] : vector<8x256xf32> to vector<8xf32>
    %43 = vector.shape_cast %42 : vector<8xf32> to vector<8x1xf32>
    %c0_27 = arith.constant 0 : index
    %44 = memref.load %arg9[%c0_27] : memref<1xf32, #tpu.memory_space<smem>>
    %45 = vector.broadcast %44 : f32 to vector<8x1xf32>
    %46 = arith.addf %43, %45 : vector<8x1xf32>
    %cst_28 = arith.constant 0.000000e+00 : f32
    %47 = vector.broadcast %cst_28 : f32 to vector<8x1xf32>
    %48 = arith.cmpf olt, %46, %47 : vector<8x1xf32>
    %cst_29 = arith.constant 0.000000e+00 : f32
    %49 = vector.broadcast %cst_29 : f32 to vector<8x1xf32>
    %50 = arith.subf %49, %46 : vector<8x1xf32>
    %51 = arith.select %48, %46, %50 : vector<8x1xi1>, vector<8x1xf32>
    %52 = math.exp %51 : vector<8x1xf32>
    %cst_30 = arith.constant 1.000000e+00 : f32
    %53 = vector.broadcast %cst_30 : f32 to vector<8x1xf32>
    %54 = arith.addf %53, %52 : vector<8x1xf32>
    %55 = tpu.reciprocal %54 {approx = true} : vector<8x1xf32> -> vector<8x1xf32>
    %56 = arith.mulf %52, %55 : vector<8x1xf32>
    %57 = arith.select %48, %56, %55 : vector<8x1xi1>, vector<8x1xf32>
    %c0_31 = arith.constant 0 : index
    %c0_32 = arith.constant 0 : index
    %58 = vector.load %arg12[%c0_31, %c0_32] : memref<8x1xf32, #tpu.memory_space<vmem>>, vector<8x1xf32>
    tpu.vector_store %arg12[%c0_31, %c0_32], %57 {strides = array<i32>} : memref<8x1xf32, #tpu.memory_space<vmem>>, vector<8x1xf32>,
    return
  }
  func.func @transform_0(%arg0: i32) -> (i32, i32) {
    %c0_i32 = arith.constant 0 : i32
    %c0_i32_0 = arith.constant 0 : i32
    return %arg0, %c0_i32 : i32, i32
  }
  func.func @transform_1(%arg0: i32) -> (i32, i32) {
    %c0_i32 = arith.constant 0 : i32
    %c0_i32_0 = arith.constant 0 : i32
    %c0_i32_1 = arith.constant 0 : i32
    return %c0_i32, %c0_i32_0 : i32, i32
  }
  func.func @transform_2(%arg0: i32) -> (i32, i32) {
    %c0_i32 = arith.constant 0 : i32
    %c0_i32_0 = arith.constant 0 : i32
    %c0_i32_1 = arith.constant 0 : i32
    return %c0_i32, %c0_i32_0 : i32, i32
  }
  func.func @transform_3(%arg0: i32) -> (i32, i32) {
    %c0_i32 = arith.constant 0 : i32
    %c0_i32_0 = arith.constant 0 : i32
    %c0_i32_1 = arith.constant 0 : i32
    return %c0_i32, %c0_i32_0 : i32, i32
  }
  func.func @transform_4(%arg0: i32) -> (i32, i32) {
    %c0_i32 = arith.constant 0 : i32
    %c0_i32_0 = arith.constant 0 : i32
    %c0_i32_1 = arith.constant 0 : i32
    return %c0_i32, %c0_i32_0 : i32, i32
  }
  func.func @transform_5(%arg0: i32) -> (i32, i32) {
    %c0_i32 = arith.constant 0 : i32
    %c0_i32_0 = arith.constant 0 : i32
    %c0_i32_1 = arith.constant 0 : i32
    return %c0_i32, %c0_i32_0 : i32, i32
  }
  func.func @transform_6(%arg0: i32) -> (i32, i32) {
    %c0_i32 = arith.constant 0 : i32
    %c0_i32_0 = arith.constant 0 : i32
    %c0_i32_1 = arith.constant 0 : i32
    return %c0_i32, %c0_i32_0 : i32, i32
  }
  func.func @transform_7(%arg0: i32) -> (i32, i32) {
    %c0_i32 = arith.constant 0 : i32
    %c0_i32_0 = arith.constant 0 : i32
    %c0_i32_1 = arith.constant 0 : i32
    return %c0_i32, %c0_i32_0 : i32, i32
  }
  func.func @transform_8(%arg0: i32) -> i32 {
    %c0_i32 = arith.constant 0 : i32
    %c0_i32_0 = arith.constant 0 : i32
    return %c0_i32 : i32
  }
  func.func @transform_9(%arg0: i32) -> (i32, i32) {
    %c0_i32 = arith.constant 0 : i32
    %c0_i32_0 = arith.constant 0 : i32
    return %arg0, %c0_i32 : i32, i32
  }
  func.func @transform_10(%arg0: i32) -> (i32, i32) {
    %c0_i32 = arith.constant 0 : i32
    %c0_i32_0 = arith.constant 0 : i32
    return %arg0, %c0_i32 : i32, i32
  }
  func.func @transform_11(%arg0: i32) -> (i32, i32) {
    %c0_i32 = arith.constant 0 : i32
    %c0_i32_0 = arith.constant 0 : i32
    return %arg0, %c0_i32 : i32, i32
  }
}

</mosaic_0001>

<bundles_post_ra>
// kernel: tpu_custom_call.1
= control target key start
LH: loop header
LB: loop body
LE: loop exit
PB: predicated region body
PF: predicated region fallthrough
CT: control target
= control target key end

     0   :  { %18 = vsyncpa [#allocation4], 0  ;;  %s2462_s0 = inlined_call_operand.vmem [shape: bf16[8,32], index: 0, kind: input, shape index: {}]   ;;  %s2463_s1 = inlined_call_operand.vmem [shape: bf16[32,8], index: 1, kind: input, shape index: {}]   ;;  %s2464_s2 = inlined_call_operand.vmem [shape: bf16[8,32], index: 2, kind: input, shape index: {}]   ;;  %s2465_s3 = inlined_call_operand.hbm [shape: bf16[96,1024], index: 3, kind: input, shape index: {}]   ;;  %s2466_s4 = inlined_call_operand.vmem [shape: f32[1,1024], index: 4, kind: input, shape index: {}]   ;;  %s2467_s5 = inlined_call_operand.hbm [shape: bf16[1024,256], index: 5, kind: input, shape index: {}]   ;;  %s2468_s6 = inlined_call_operand.vmem [shape: f32[1,256], index: 6, kind: input, shape index: {}]   ;;  %s2469_s7 = inlined_call_operand.vmem [shape: f32[1,256], index: 7, kind: input, shape index: {}]   ;;  %s2470_s8 = inlined_call_operand.<no memory space> [shape: f32[1], index: 8, kind: input, shape index: {}]   ;;  %s2471_s9 = inlined_call_operand.hbm [shape: bf16[8,8], index: 9, kind: output, shape index: {0}]   ;;  %s2472_s10 = inlined_call_operand.hbm [shape: f32[8,32], index: 10, kind: output, shape index: {1}]   ;;  %s2473_s11 = inlined_call_operand.vmem [shape: f32[8,1], index: 11, kind: output, shape index: {2}]  }
   0x1   :  { %19 = vsyncpa [#allocation7], 0 }
   0x2   :  { %20 = vsyncpa [#allocation5], 0 }
   0x3   :  { %21 = vsyncpa [#allocation10], 0  ;;  %s2256_s17 = smov [#allocation3]   ;;  %s2160_s21 = scalar_lea.hbm %s2465_s3, 6144 }
   0x4   :  { %s33_s18 = sshll.u32 %s2256_s17, 4  ;;  %p2161_p0 = scmp.ne.s32.totalorder %s2465_s3, %s2160_s21  ;;  %s34_s18 = int_to_ptr.vmem [resolvable:$true] %s33_s18 }
   0x5   :  { %p2164_p1 = scmp.lt.u32.totalorder %s2160_s21, %s2465_s3 }
   0x7   :  { %p2166_p2 = pnand %p2164_p1, %p2161_p0 }
   0x9   :  { %2169 = shalt.err (!%p2166_p2)
}
   0xa   :  { %s2170_s26 = scalar_lea.vmem %s34_s18, 6144  ;;  %p2175_p4 = scmp.lt.s32.totalorder %s34_s18, %s34_s18 }
   0xb   :  { %p2171_p3 = scmp.ne.s32.totalorder %s34_s18, %s2170_s26  ;;  %p2176_p5 = scmp.lt.s32.totalorder %s2170_s26, %s2170_s26 }
   0xd   :  { %p2177_p6 = por %p2176_p5, %p2175_p4 }
   0xf   :  { %p2178_p7 = pnand %p2177_p6, %p2171_p3 }
  0x11   :  { %2181 = shalt.err (!%p2178_p7)
}
  0x12   :  { %s2257_s27 = smov 512   ;;  %s2258_s28 = smov 32  }
  0x13   :  { %39 = dma.hbm_to_vmem [thread:$0]  %s2465_s3, 6144, %s34_s18, [#allocation4], %s2257_s27, %s2257_s27, %s2258_s28  }
  0x14   :  { %s2259_s12 = smov [#allocation6]   ;;  %s2182_s16 = scalar_lea.hbm %s2467_s5, 16384 }
  0x15   :  { %s47_s13 = sshll.u32 %s2259_s12, 4  ;;  %p2183_p8 = scmp.ne.s32.totalorder %s2467_s5, %s2182_s16  ;;  %s48_s13 = int_to_ptr.vmem [resolvable:$true] %s47_s13 }
  0x16   :  { %p2186_p9 = scmp.lt.u32.totalorder %s2182_s16, %s2467_s5 }
  0x18   :  { %p2188_p10 = pnand %p2186_p9, %p2183_p8 }
  0x1a   :  { %2191 = shalt.err (!%p2188_p10)
}
  0x1b   :  { %s2192_s22 = scalar_lea.vmem %s48_s13, 16384  ;;  %p2197_p12 = scmp.lt.s32.totalorder %s48_s13, %s48_s13 }
  0x1c   :  { %p2193_p11 = scmp.ne.s32.totalorder %s48_s13, %s2192_s22  ;;  %p2198_p13 = scmp.lt.s32.totalorder %s2192_s22, %s2192_s22 }
  0x1e   :  { %p2199_p0 = por %p2198_p13, %p2197_p12 }
  0x20   :  { %p2200_p1 = pnand %p2199_p0, %p2193_p11 }
  0x22   :  { %2203 = shalt.err (!%p2200_p1)
}
  0x23   :  { %s2260_s3 = smov 128   ;;  %s2261_s18 = smov 8  }
  0x24   :  { %53 = dma.hbm_to_vmem [thread:$0]  %s2467_s5, 16384, %s48_s13, [#allocation7], %s2260_s3, %s2260_s3, %s2261_s18  }
  0x25   :  { %2248 = dma.done.wait [#allocation4], 6144  }
  0x26   :  { %2249 = vsyncadd [#allocation4], 4294961152 }
  0x27   :  { %2250 = dma.done.wait [#allocation7], 16384  }
  0x28   :  { %2251 = vsyncadd [#allocation7], 4294950912  ;;  %v2262_v0 = vmov 0.0   ;;  %vm2263_vm0 = vmmov 0   ;;  %v1958_v1 = vld [vmem:[%s2463_s1] sm:$0xff]   ;;  %v1959_v2 = vld [vmem:[%s2463_s1 + $0x8] sm:$0xff]  }
  0x29   :  { %1920 = vmatprep.subr.bf16.mxu0 %v2262_v0  ;;  %1924 = vmatprep.mubr.msk.bf16.mxu0 %vm2263_vm0, %v2262_v0  ;;  %v2362_v3 = vld [vmem:[%s2462_s0] sm:$0xf]  ;;  %vm84_vm1 = vcmask 261120   ;;  %vm128_vm2 = vcmask 64512   ;;  %vm145_vm3 = vcmask 1043456   ;;  %vm189_vm4 = vcmask 60416  }
  0x2a   :  { %1928 = vmatprep.subr.bf16.mxu1 %v2262_v0  ;;  %1930 = vmatprep.mubr.msk.bf16.mxu1 %vm2263_vm0, %v2262_v0  ;;  %v141_v14 = vld [vmem:[%s2464_s2] sm:$0xf]  ;;  %v208_v22 = vld [vmem:[#allocation3 + $0x8] sm:$0xff]  ;;  %s2265_s2 = smov 64   ;;  %vm204_vm5 = vcmask 523264   ;;  %vm537_vm6 = vcmask 785408  }
  0x2b   :  { %1921 = vmatpush3.bf16.msra.mxu0 %v1958_v1  ;;  %v147_v15 = vsel %vm145_vm3, %v141_v14, 0  ;;  %v207_v20 = vld [vmem:[#allocation3] sm:$0xff]  ;;  %v212_v25 = vld [vmem:[#allocation3 + $0x28] sm:$0xff]  ;;  %v192_v14 = vunpack.c.l.bf16 %v2362_v3  ;;  %s2267_s16 = smov [#allocation9]  }
  0x2c   :  { %1922 = vmatprep.subr.bf16.mxu0 %v2262_v0  ;;  %1929 = vmatpush3.bf16.msra.mxu1 %v147_v15  ;;  %v211_v21 = vld [vmem:[#allocation3 + $0x20] sm:$0xff]  ;;  %v1737_v28 = vcombine.low %v208_v22, %v212_v25  ;;  %v1738_v29 = vcombine.high %v208_v22, %v212_v25  ;;  %v216_v31 = vld [vmem:[#allocation3 + $0x48] sm:$0xff]  ;;  %v218_v25 = vld [vmem:[#allocation3 + $0x58] sm:$0xff]  ;;  %s1713_s17 = sshll.u32 %s2267_s16, 4  ;;  %s1714_s17 = int_to_ptr.vmem [resolvable:$true] %s1713_s17 }
  0x2d   :  { %v1735_v23 = vcombine.low %v207_v20, %v211_v21  ;;  %v1736_v24 = vcombine.high %v207_v20, %v211_v21  ;;  %v215_v26 = vld [vmem:[#allocation3 + $0x40] sm:$0xff]  ;;  %v220_v32 = vld [vmem:[#allocation3 + $0x68] sm:$0xff] }
  0x2e   :  { %v219_v27 = vld [vmem:[#allocation3 + $0x60] sm:$0xff]  ;;  %v1746_v34 = vcombine.high %v216_v31, %v220_v32  ;;  %v224_v36 = vld [vmem:[#allocation3 + $0x88] sm:$0xff]  ;;  %v1745_v39 = vcombine.low %v216_v31, %v220_v32  ;;  %v225_v31 = vld [vmem:[#allocation3 + $0x90] sm:$0xff] }
  0x2f   :  { %1923 = vmatpush3.bf16.msra.mxu0 %v1959_v2  ;;  %v1744_v30 = vcombine.high %v215_v26, %v219_v27  ;;  %v223_v33 = vld [vmem:[#allocation3 + $0x80] sm:$0xff]  ;;  %540 = vmatprep.subr.bf16.mxu1 %v1736_v24  ;;  %v228_v37 = vld [vmem:[#allocation3 + $0xa8] sm:$0xff]  ;;  %v1743_v38 = vcombine.low %v215_v26, %v219_v27  ;;  %v221_v24 = vld [vmem:[#allocation3 + $0x70] sm:$0xff] }
  0x30   :  { %v227_v35 = vld [vmem:[#allocation3 + $0xa0] sm:$0xff]  ;;  %581 = vmatprep.subr.bf16.mxu0 %v1738_v29  ;;  %v1754_v41 = vcombine.high %v224_v36, %v228_v37  ;;  %v232_v44 = vld [vmem:[#allocation3 + $0xc8] sm:$0xff]  ;;  %v1753_v47 = vcombine.low %v224_v36, %v228_v37  ;;  %v222_v26 = vld [vmem:[#allocation3 + $0x78] sm:$0xff] }
  0x31   :  { %v1752_v40 = vcombine.high %v223_v33, %v227_v35  ;;  %v231_v42 = vld [vmem:[#allocation3 + $0xc0] sm:$0xff]  ;;  %v236_v45 = vld [vmem:[#allocation3 + $0xe8] sm:$0xff]  ;;  %v1751_v46 = vcombine.low %v223_v33, %v227_v35  ;;  %v229_v33 = vld [vmem:[#allocation3 + $0xb0] sm:$0xff]  ;;  %v1749_v37 = vcombine.low %v218_v25, %v222_v26 }
  0x32   :  { %1925 = vmatmul.mubr.msk.bf16.vlgmr.msra.gmra.mrb[0].mxu0 %vm84_vm1, %v2362_v3  ;;  %v235_v43 = vld [vmem:[#allocation3 + $0xe0] sm:$0xff]  ;;  %v1762_v49 = vcombine.high %v232_v44, %v236_v45  ;;  %v240_v52 = vld [vmem:[#allocation3 + $0x108] sm:$0xff]  ;;  %v1761_v55 = vcombine.low %v232_v44, %v236_v45  ;;  %v230_v35 = vld [vmem:[#allocation3 + $0xb8] sm:$0xff] }
  0x33   :  { %582 = vmatpush1.bf16.msra.mxu0 %v1737_v28  ;;  %v1760_v48 = vcombine.high %v231_v42, %v235_v43  ;;  %v239_v50 = vld [vmem:[#allocation3 + $0x100] sm:$0xff]  ;;  %v244_v53 = vld [vmem:[#allocation3 + $0x128] sm:$0xff]  ;;  %v1759_v54 = vcombine.low %v231_v42, %v235_v43  ;;  %v238_v42 = vld [vmem:[#allocation3 + $0xf8] sm:$0xff]  ;;  %v1755_v43 = vcombine.low %v225_v31, %v229_v33 }
  0x34   :  { %583 = vmatprep.subr.bf16.mxu0 %v1746_v34  ;;  %v243_v51 = vld [vmem:[#allocation3 + $0x120] sm:$0xff]  ;;  %v1770_v57 = vcombine.high %v240_v52, %v244_v53  ;;  %v1769_v59 = vcombine.low %v240_v52, %v244_v53  ;;  %v248_v62 = vld [vmem:[#allocation3 + $0x148] sm:$0xff]  ;;  %v226_v34 = vld [vmem:[#allocation3 + $0x98] sm:$0xff] }
  0x35   :  { %v1768_v56 = vcombine.high %v239_v50, %v243_v51  ;;  %v1767_v58 = vcombine.low %v239_v50, %v243_v51  ;;  %v247_v60 = vld [vmem:[#allocation3 + $0x140] sm:$0xff]  ;;  %v252_v0 = vld [vmem:[#allocation3 + $0x168] sm:$0xff]  ;;  %v1757_v44 = vcombine.low %v226_v34, %v230_v35  ;;  %v246_v50 = vld [vmem:[#allocation3 + $0x138] sm:$0xff] }
  0x36   :  { %v251_v61 = vld [vmem:[#allocation3 + $0x160] sm:$0xff]  ;;  %v1777_v2 = vcombine.low %v248_v62, %v252_v0 }
  0x37   :  { %584 = vmatpush1.bf16.msra.mxu0 %v1745_v39  ;;  %v1776_v63 = vcombine.high %v247_v60, %v251_v61  ;;  %v1775_v1 = vcombine.low %v247_v60, %v251_v61  ;;  %v233_v39 = vld [vmem:[#allocation3 + $0xd0] sm:$0xff] }
  0x38   :  { %585 = vmatprep.subr.bf16.mxu0 %v1754_v41  ;;  %v234_v41 = vld [vmem:[#allocation3 + $0xd8] sm:$0xff] }
  0x39   :  { %v1765_v52 = vcombine.low %v234_v41, %v238_v42 }
  0x3b   :  { %586 = vmatpush1.bf16.msra.mxu0 %v1753_v47  ;;  %v241_v47 = vld [vmem:[#allocation3 + $0x110] sm:$0xff] }
  0x3c   :  { %587 = vmatprep.subr.bf16.mxu0 %v1762_v49  ;;  %v242_v49 = vld [vmem:[#allocation3 + $0x118] sm:$0xff] }
  0x3d   :  { %v1773_v60 = vcombine.low %v242_v49, %v246_v50 }
  0x3f   :  { %588 = vmatpush1.bf16.msra.mxu0 %v1761_v55  ;;  %v249_v55 = vld [vmem:[#allocation3 + $0x150] sm:$0xff] }
  0x40   :  { %589 = vmatprep.subr.bf16.mxu0 %v1770_v57  ;;  %v250_v57 = vld [vmem:[#allocation3 + $0x158] sm:$0xff] }
  0x43   :  { %590 = vmatpush1.bf16.msra.mxu0 %v1769_v59 }
 0x105   :  { %v122_v4 = vpop.f32.mrb[0].mxu0 }
 0x106   :  { %v1926_v5 = vpop.f32.mrb[1].mxu0  ;;  %v129_v6 = vsel %vm128_vm2, %v122_v4, -inf }
 0x107   :  { %130 = vmax.xlane.f32.xlu0 %v129_v6  ;;  %v125_v7 = vpop.f32.mrb[2].mxu0  ;;  %v209_v5 = vld [vmem:[#allocation3 + $0x10] sm:$0xff] }
 0x108   :  { %v1927_v8 = vpop.f32.mrb[3].mxu0  ;;  %v213_v6 = vld [vmem:[#allocation3 + $0x30] sm:$0xff]  ;;  %v210_v7 = vld [vmem:[#allocation3 + $0x18] sm:$0xff] }
 0x109   :  { %v1740_v8 = vcombine.high %v209_v5, %v213_v6 }
 0x194   :  { %v131_v9 = vpop.xlane.xlu0 %130 }
 0x195   :  { %v132_v10 = vsub.f32 %v122_v4, %v131_v9  ;;  %v1778_v4 = vcombine.high %v248_v62, %v252_v0  ;;  %v214_v9 = vld [vmem:[#allocation3 + $0x38] sm:$0xff] }
 0x197   :  { %v133_v11 = vmul.f32 1.442695, %v132_v10  ;;  %591 = vmatprep.subr.bf16.mxu0 %v1778_v4  ;;  %v1739_v10 = vcombine.low %v209_v5, %v213_v6  ;;  %v1960_v4 = vld [vmem:[#allocation6] ss:$8 sps:$4 sm:$0xff]   ;;  %v1965_v6 = vld [vmem:[#allocation6 + $0x14] ss:$8 sps:$4 sm:$0xff]  }
 0x198   :  { %592 = vmatpush1.bf16.msra.mxu0 %v1777_v2  ;;  %v1980_v2 = vld [vmem:[#allocation6 + $0x204] ss:$8 sps:$4 sm:$0xff]   ;;  %v1978_v5 = vld [vmem:[#allocation6 + $0x200] ss:$8 sps:$4 sm:$0xff]  }
 0x199   :  { %2152 = vpow2.f32 %v133_v11  ;;  %v1741_v11 = vcombine.low %v210_v7, %v214_v9 }
 0x1a3   :  { %v2153_v12 = vpop.eup %2152 }
 0x1a4   :  { %v135_v13 = vsel %vm128_vm2, %v2153_v12, 0.0 }
 0x1a5   :  { %136 = vadd.xlane.f32.xlu0 %v135_v13  ;;  %v2264_v13 = vmov 0  }
 0x1a6   :  { %613 = vmatprep.mubr.bf16.mxu0 %v2264_v13 }
 0x232   :  { %v137_v16 = vpop.xlane.xlu0 %136 }
 0x233   :  { %2154 = vrcp.f32 %v137_v16 }
 0x23d   :  { %v2155_v17 = vpop.eup %2154 }
 0x23e   :  { %v139_v18 = vmul.f32 %v2155_v17, %v2153_v12  ;;  %v1742_v12 = vcombine.high %v210_v7, %v214_v9  ;;  %v1986_v7 = vld [vmem:[#allocation6 + $0x214] ss:$8 sps:$4 sm:$0xff]   ;;  %v1984_v9 = vld [vmem:[#allocation6 + $0x210] ss:$8 sps:$4 sm:$0xff]  }
 0x240   :  { %v140_v19 = vpack.c.bf16 %v139_v18, %v139_v18  ;;  %663 = vmatprep.subr.bf16.mxu0 %v1742_v12  ;;  %v1966_v12 = vld [vmem:[#allocation6 + $0x20] ss:$8 sps:$4 sm:$0xff]  }
 0x242   :  { %1931 = vmatmul.mubr.msk.bf16.vlgmr.msra.gmra.mrb[0].mxu1 %vm128_vm2, %v140_v19  ;;  %190 = vst.msk [vmem:[#allocation8] sm:$0xf] %vm189_vm4, %v140_v19 }
 0x243   :  { %541 = vmatpush1.bf16.msra.mxu1 %v1735_v23  ;;  %572 = vmatprep.mubr.bf16.mxu1 %v2264_v13  ;;  %v217_v23 = vld [vmem:[#allocation3 + $0x50] sm:$0xff] }
 0x244   :  { %542 = vmatprep.subr.bf16.mxu1 %v1744_v30  ;;  %v1748_v29 = vcombine.high %v217_v23, %v221_v24  ;;  %v1750_v30 = vcombine.high %v218_v25, %v222_v26  ;;  %v1747_v36 = vcombine.low %v217_v23, %v221_v24  ;;  %v2010_v23 = vld [vmem:[#allocation6 + $0x254] ss:$8 sps:$4 sm:$0xff]   ;;  %v1975_v24 = vld [vmem:[#allocation6 + $0x50] ss:$8 sps:$4 sm:$0xff]   ;;  %v1983_v26 = vld [vmem:[#allocation6 + $0x64] ss:$8 sps:$4 sm:$0xff]  }
 0x245   :  { %v2008_v25 = vld [vmem:[#allocation6 + $0x250] ss:$8 sps:$4 sm:$0xff]  }
 0x247   :  { %543 = vmatpush1.bf16.msra.mxu1 %v1743_v38  ;;  %v1758_v38 = vcombine.high %v226_v34, %v230_v35  ;;  %v1995_v34 = vld [vmem:[#allocation6 + $0x84] ss:$8 sps:$4 sm:$0xff]  }
 0x248   :  { %544 = vmatprep.subr.bf16.mxu1 %v1752_v40  ;;  %v237_v40 = vld [vmem:[#allocation3 + $0xf0] sm:$0xff]  ;;  %v2028_v35 = vld [vmem:[#allocation6 + $0x284] ss:$8 sps:$4 sm:$0xff]  }
 0x249   :  { %v1764_v45 = vcombine.high %v233_v39, %v237_v40  ;;  %v1763_v51 = vcombine.low %v233_v39, %v237_v40  ;;  %v2007_v39 = vld [vmem:[#allocation6 + $0xa4] ss:$8 sps:$4 sm:$0xff]   ;;  %v2005_v40 = vld [vmem:[#allocation6 + $0xa0] ss:$8 sps:$4 sm:$0xff]  }
 0x24b   :  { %545 = vmatpush1.bf16.msra.mxu1 %v1751_v46  ;;  %v1766_v46 = vcombine.high %v234_v41, %v238_v42  ;;  %v2013_v41 = vld [vmem:[#allocation6 + $0xb4] ss:$8 sps:$4 sm:$0xff]   ;;  %v2011_v42 = vld [vmem:[#allocation6 + $0xb0] ss:$8 sps:$4 sm:$0xff]  }
 0x24c   :  { %546 = vmatprep.subr.bf16.mxu1 %v1760_v48  ;;  %v245_v48 = vld [vmem:[#allocation3 + $0x130] sm:$0xff] }
 0x24d   :  { %v1772_v53 = vcombine.high %v241_v47, %v245_v48  ;;  %v1771_v59 = vcombine.low %v241_v47, %v245_v48  ;;  %v2031_v47 = vld [vmem:[#allocation6 + $0xe4] ss:$8 sps:$4 sm:$0xff]   ;;  %v2029_v48 = vld [vmem:[#allocation6 + $0xe0] ss:$8 sps:$4 sm:$0xff]  }
 0x24f   :  { %547 = vmatpush1.bf16.msra.mxu1 %v1759_v54  ;;  %v1774_v54 = vcombine.high %v242_v49, %v246_v50  ;;  %v2034_v49 = vld [vmem:[#allocation6 + $0x294] ss:$8 sps:$4 sm:$0xff]   ;;  %v2032_v50 = vld [vmem:[#allocation6 + $0x290] ss:$8 sps:$4 sm:$0xff]  }
 0x250   :  { %548 = vmatprep.subr.bf16.mxu1 %v1768_v56  ;;  %v253_v56 = vld [vmem:[#allocation3 + $0x170] sm:$0xff] }
 0x251   :  { %v1780_v61 = vcombine.high %v249_v55, %v253_v56 }
 0x253   :  { %549 = vmatpush1.bf16.msra.mxu1 %v1767_v58  ;;  %v254_v58 = vld [vmem:[#allocation3 + $0x178] sm:$0xff] }
 0x254   :  { %550 = vmatprep.subr.bf16.mxu1 %v1776_v63  ;;  %v1782_v62 = vcombine.high %v250_v57, %v254_v58  ;;  %v1779_v63 = vcombine.low %v249_v55, %v253_v56  ;;  %v1781_v0 = vcombine.low %v250_v57, %v254_v58  ;;  %v2043_v55 = vld [vmem:[#allocation6 + $0x104] ss:$8 sps:$4 sm:$0xff]   ;;  %v2044_v56 = vld [vmem:[#allocation6 + $0x2b0] ss:$8 sps:$4 sm:$0xff]   ;;  %v2046_v57 = vld [vmem:[#allocation6 + $0x2b4] ss:$8 sps:$4 sm:$0xff]  }
 0x255   :  { %v2050_v58 = vld [vmem:[#allocation6 + $0x2c0] ss:$8 sps:$4 sm:$0xff]  }
 0x257   :  { %551 = vmatpush1.bf16.msra.mxu1 %v1775_v1  ;;  %v1962_v1 = vld [vmem:[#allocation6 + $0x4] ss:$8 sps:$4 sm:$0xff]  }
 0x258   :  { %622 = vmatprep.subr.bf16.mxu1 %v1740_v8  ;;  %v1963_v8 = vld [vmem:[#allocation6 + $0x10] ss:$8 sps:$4 sm:$0xff]  }
 0x315   :  { %v183_v15 = vpop.f32.mrb[0].mxu1 }
 0x316   :  { %v193_v16 = vmul.f32 %v192_v14, %v183_v15  ;;  %191 = vst.msk [vmem:[#allocation9] sm:$0xff] %vm84_vm1, %v183_v15  ;;  %v1932_v17 = vpop.f32.mrb[1].mxu1  ;;  %v194_v18 = vpack.c.bf16 %v183_v15, %v183_v15  ;;  %v1971_v14 = vld [vmem:[#allocation6 + $0x34] ss:$8 sps:$4 sm:$0xff]  }
 0x317   :  { %v186_v19 = vpop.f32.mrb[2].mxu1  ;;  %v1998_v15 = vld [vmem:[#allocation6 + $0x234] ss:$8 sps:$4 sm:$0xff]   ;;  %v1996_v17 = vld [vmem:[#allocation6 + $0x230] ss:$8 sps:$4 sm:$0xff]  }
 0x318   :  { %197 = vrot.lane.b32.xlu1 %v194_v18, %s2258_s28  ;;  %v1933_v20 = vpop.f32.mrb[3].mxu1  ;;  %v195_v21 = vpack.c.bf16 %v193_v16, %v193_v16  ;;  %v1969_v16 = vld [vmem:[#allocation6 + $0x30] ss:$8 sps:$4 sm:$0xff]   ;;  %v1974_v18 = vld [vmem:[#allocation6 + $0x44] ss:$8 sps:$4 sm:$0xff]  }
 0x319   :  { %v2004_v19 = vld [vmem:[#allocation6 + $0x244] ss:$8 sps:$4 sm:$0xff]   ;;  %v1972_v20 = vld [vmem:[#allocation6 + $0x40] ss:$8 sps:$4 sm:$0xff]  }
 0x31c   :  { %200 = vrot.lane.b32.xlu1 %v195_v21, %s2265_s2  ;;  %v2002_v21 = vld [vmem:[#allocation6 + $0x240] ss:$8 sps:$4 sm:$0xff]  }
 0x38a   :  { %v198_v22 = vpop.permute.xlu1 %197 }
 0x38b   :  { %v203_v27 = vsel %vm84_vm1, %v2362_v3, %v198_v22  ;;  %v1756_v3 = vcombine.high %v225_v31, %v229_v33  ;;  %v1977_v22 = vld [vmem:[#allocation6 + $0x54] ss:$8 sps:$4 sm:$0xff]   ;;  %v2020_v33 = vld [vmem:[#allocation6 + $0x270] ss:$8 sps:$4 sm:$0xff]  }
 0x38c   :  { %v2022_v31 = vld [vmem:[#allocation6 + $0x274] ss:$8 sps:$4 sm:$0xff]  }
 0x38e   :  { %v201_v28 = vpop.permute.xlu1 %200 }
 0x38f   :  { %v2377_v32 = vsel %vm204_vm5, %v203_v27, %v201_v28  ;;  %v2016_v27 = vld [vmem:[#allocation6 + $0x264] ss:$8 sps:$4 sm:$0xff]   ;;  %v1981_v28 = vld [vmem:[#allocation6 + $0x60] ss:$8 sps:$4 sm:$0xff]  }
 0x390   :  { %1783 = vmatmul.mubr.msk.bf16.vlgmr.msra.gmra.mrb[4].mxu1 %vm537_vm6, %v2377_v32  ;;  %1784 = vmatmul.mubr.msk.bf16.vlgmr.msra.gmra.mrb[4].mxu0 %vm537_vm6, %v2377_v32 }
 0x391   :  { %623 = vmatpush1.bf16.msra.mxu1 %v1739_v10  ;;  %664 = vmatpush1.bf16.msra.mxu0 %v1741_v11  ;;  %v1968_v10 = vld [vmem:[#allocation6 + $0x24] ss:$8 sps:$4 sm:$0xff]  }
 0x392   :  { %624 = vmatprep.subr.bf16.mxu1 %v1748_v29  ;;  %665 = vmatprep.subr.bf16.mxu0 %v1750_v30  ;;  %v1992_v11 = vld [vmem:[#allocation6 + $0x224] ss:$8 sps:$4 sm:$0xff]   ;;  %v2014_v29 = vld [vmem:[#allocation6 + $0x260] ss:$8 sps:$4 sm:$0xff]   ;;  %v1989_v30 = vld [vmem:[#allocation6 + $0x74] ss:$8 sps:$4 sm:$0xff]  }
 0x393   :  { %654 = vmatprep.mubr.bf16.mxu1 %v2264_v13  ;;  %695 = vmatprep.mubr.bf16.mxu0 %v2264_v13  ;;  %v1990_v13 = vld [vmem:[#allocation6 + $0x220] ss:$8 sps:$4 sm:$0xff]  }
 0x395   :  { %625 = vmatpush1.bf16.msra.mxu1 %v1747_v36  ;;  %666 = vmatpush1.bf16.msra.mxu0 %v1749_v37  ;;  %v1993_v36 = vld [vmem:[#allocation6 + $0x80] ss:$8 sps:$4 sm:$0xff]  }
 0x396   :  { %626 = vmatprep.subr.bf16.mxu1 %v1756_v3  ;;  %667 = vmatprep.subr.bf16.mxu0 %v1758_v38  ;;  %v2026_v37 = vld [vmem:[#allocation6 + $0x280] ss:$8 sps:$4 sm:$0xff]   ;;  %v2001_v3 = vld [vmem:[#allocation6 + $0x94] ss:$8 sps:$4 sm:$0xff]   ;;  %v1999_v38 = vld [vmem:[#allocation6 + $0x90] ss:$8 sps:$4 sm:$0xff]  }
 0x399   :  { %627 = vmatpush1.bf16.msra.mxu1 %v1755_v43  ;;  %668 = vmatpush1.bf16.msra.mxu0 %v1757_v44  ;;  %v2019_v43 = vld [vmem:[#allocation6 + $0xc4] ss:$8 sps:$4 sm:$0xff]   ;;  %v2017_v44 = vld [vmem:[#allocation6 + $0xc0] ss:$8 sps:$4 sm:$0xff]  }
 0x39a   :  { %628 = vmatprep.subr.bf16.mxu1 %v1764_v45  ;;  %669 = vmatprep.subr.bf16.mxu0 %v1766_v46  ;;  %v2025_v45 = vld [vmem:[#allocation6 + $0xd4] ss:$8 sps:$4 sm:$0xff]   ;;  %v2023_v46 = vld [vmem:[#allocation6 + $0xd0] ss:$8 sps:$4 sm:$0xff]  }
 0x39d   :  { %629 = vmatpush1.bf16.msra.mxu1 %v1763_v51  ;;  %670 = vmatpush1.bf16.msra.mxu0 %v1765_v52  ;;  %v2037_v51 = vld [vmem:[#allocation6 + $0xf4] ss:$8 sps:$4 sm:$0xff]   ;;  %v2035_v52 = vld [vmem:[#allocation6 + $0xf0] ss:$8 sps:$4 sm:$0xff]  }
 0x39e   :  { %630 = vmatprep.subr.bf16.mxu1 %v1772_v53  ;;  %671 = vmatprep.subr.bf16.mxu0 %v1774_v54  ;;  %v2038_v53 = vld [vmem:[#allocation6 + $0x2a0] ss:$8 sps:$4 sm:$0xff]   ;;  %v2040_v54 = vld [vmem:[#allocation6 + $0x2a4] ss:$8 sps:$4 sm:$0xff]  }
 0x3a1   :  { %631 = vmatpush1.bf16.msra.mxu1 %v1771_v59  ;;  %672 = vmatpush1.bf16.msra.mxu0 %v1773_v60  ;;  %v2052_v59 = vld [vmem:[#allocation6 + $0x2c4] ss:$8 sps:$4 sm:$0xff]   ;;  %v2056_v60 = vld [vmem:[#allocation6 + $0x2d0] ss:$8 sps:$4 sm:$0xff]  }
 0x3a2   :  { %632 = vmatprep.subr.bf16.mxu1 %v1780_v61  ;;  %673 = vmatprep.subr.bf16.mxu0 %v1782_v62  ;;  %v2058_v61 = vld [vmem:[#allocation6 + $0x2d4] ss:$8 sps:$4 sm:$0xff]   ;;  %v2064_v62 = vld [vmem:[#allocation6 + $0x2e4] ss:$8 sps:$4 sm:$0xff]  }
 0x3a5   :  { %633 = vmatpush1.bf16.msra.mxu1 %v1779_v63  ;;  %674 = vmatpush1.bf16.msra.mxu0 %v1781_v0  ;;  %v2062_v63 = vld [vmem:[#allocation6 + $0x2e0] ss:$8 sps:$4 sm:$0xff]   ;;  %v2070_v0 = vld [vmem:[#allocation6 + $0x2f4] ss:$8 sps:$4 sm:$0xff]  }
 0x3a6   :  { %1500 = vmatprep.subr.bf16.mxu0 %v1962_v1  ;;  %1582 = vmatprep.subr.bf16.mxu1 %v1980_v2  ;;  %v2068_v1 = vld [vmem:[#allocation6 + $0x2f0] ss:$8 sps:$4 sm:$0xff]   ;;  %v2076_v2 = vld [vmem:[#allocation6 + $0x304] ss:$8 sps:$4 sm:$0xff]  }
 0x3a8   :  { %1785 = vmatmul.mubr.msk.bf16.vlgmr.msra.gmra.mrb[8].mxu1 %vm537_vm6, %v2377_v32  ;;  %1786 = vmatmul.mubr.msk.bf16.vlgmr.msra.gmra.mrb[8].mxu0 %vm537_vm6, %v2377_v32  ;;  %v1987_v32 = vld [vmem:[#allocation6 + $0x70] ss:$8 sps:$4 sm:$0xff]  }
 0x3a9   :  { %1501 = vmatpush1.bf16.msra.mxu0 %v1960_v4  ;;  %1583 = vmatpush1.bf16.msra.mxu1 %v1978_v5  ;;  %v257_v4 = vlaneseq }
 0x3aa   :  { %1502 = vmatprep.subr.bf16.mxu0 %v1965_v6  ;;  %1584 = vmatprep.subr.bf16.mxu1 %v1986_v7  ;;  %v2395_v7 = vld [vmem:[%s2466_s4] sm:$0xff] }
 0x3ab   :  { %v2387_v5 = vshrl.u32 %v257_v4, 7 }
 0x3ad   :  { %1503 = vmatpush1.bf16.msra.mxu0 %v1963_v8  ;;  %1585 = vmatpush1.bf16.msra.mxu1 %v1984_v9  ;;  %v2390_v6 = vsub.s32 0, %v2387_v5  ;;  %v2398_v8 = vsub.s32 1, %v2387_v5  ;;  %v271_v9 = vsub.s32 3, %v2387_v5 }
 0x3ae   :  { %1504 = vmatprep.subr.bf16.mxu0 %v1968_v10  ;;  %1586 = vmatprep.subr.bf16.mxu1 %v1992_v11 }
 0x3af   :  { %v260_v10 = vrot.slane %v2395_v7, %v2390_v6  ;;  %v264_v11 = vrot.slane %v2395_v7, %v2398_v8 }
 0x3b1   :  { %1505 = vmatpush1.bf16.msra.mxu0 %v1966_v12  ;;  %1587 = vmatpush1.bf16.msra.mxu1 %v1990_v13  ;;  %v272_v12 = vrot.slane %v2395_v7, %v271_v9  ;;  %v2080_v9 = vld [vmem:[#allocation6 + $0x310] ss:$8 sps:$4 sm:$0xff]  }
 0x3b2   :  { %1506 = vmatprep.subr.bf16.mxu0 %v1971_v14  ;;  %1588 = vmatprep.subr.bf16.mxu1 %v1998_v15 }
 0x3b5   :  { %1507 = vmatpush1.bf16.msra.mxu0 %v1969_v16  ;;  %1589 = vmatpush1.bf16.msra.mxu1 %v1996_v17 }
 0x3b6   :  { %1508 = vmatprep.subr.bf16.mxu0 %v1974_v18  ;;  %1590 = vmatprep.subr.bf16.mxu1 %v2004_v19 }
 0x3b9   :  { %1509 = vmatpush1.bf16.msra.mxu0 %v1972_v20  ;;  %1591 = vmatpush1.bf16.msra.mxu1 %v2002_v21 }
 0x3ba   :  { %1510 = vmatprep.subr.bf16.mxu0 %v1977_v22  ;;  %1592 = vmatprep.subr.bf16.mxu1 %v2010_v23 }
 0x3bd   :  { %1511 = vmatpush1.bf16.msra.mxu0 %v1975_v24  ;;  %1593 = vmatpush1.bf16.msra.mxu1 %v2008_v25 }
 0x3be   :  { %1512 = vmatprep.subr.bf16.mxu0 %v1983_v26  ;;  %1594 = vmatprep.subr.bf16.mxu1 %v2016_v27 }
 0x3c1   :  { %1513 = vmatpush1.bf16.msra.mxu0 %v1981_v28  ;;  %1595 = vmatpush1.bf16.msra.mxu1 %v2014_v29  ;;  %v2041_v28 = vld [vmem:[#allocation6 + $0x100] ss:$8 sps:$4 sm:$0xff]  }
 0x3c2   :  { %1514 = vmatprep.subr.bf16.mxu0 %v1989_v30  ;;  %1596 = vmatprep.subr.bf16.mxu1 %v2022_v31  ;;  %v2049_v30 = vld [vmem:[#allocation6 + $0x114] ss:$8 sps:$4 sm:$0xff]  }
 0x3c5   :  { %1515 = vmatpush1.bf16.msra.mxu0 %v1987_v32  ;;  %1597 = vmatpush1.bf16.msra.mxu1 %v2020_v33  ;;  %v2047_v32 = vld [vmem:[#allocation6 + $0x110] ss:$8 sps:$4 sm:$0xff]   ;;  %v2055_v33 = vld [vmem:[#allocation6 + $0x124] ss:$8 sps:$4 sm:$0xff]  }
 0x3c6   :  { %1516 = vmatprep.subr.bf16.mxu0 %v1995_v34  ;;  %1598 = vmatprep.subr.bf16.mxu1 %v2028_v35  ;;  %v2053_v34 = vld [vmem:[#allocation6 + $0x120] ss:$8 sps:$4 sm:$0xff]   ;;  %v2061_v35 = vld [vmem:[#allocation6 + $0x134] ss:$8 sps:$4 sm:$0xff]  }
 0x3c9   :  { %1517 = vmatpush1.bf16.msra.mxu0 %v1993_v36  ;;  %1599 = vmatpush1.bf16.msra.mxu1 %v2026_v37  ;;  %v275_v36 = vsub.s32 4, %v2387_v5  ;;  %v2059_v37 = vld [vmem:[#allocation6 + $0x130] ss:$8 sps:$4 sm:$0xff]  }
 0x3ca   :  { %1518 = vmatprep.subr.bf16.mxu0 %v2001_v3  ;;  %1600 = vmatprep.subr.bf16.mxu1 %v2034_v49  ;;  %v279_v3 = vsub.s32 5, %v2387_v5 }
 0x3cd   :  { %1519 = vmatpush1.bf16.msra.mxu0 %v1999_v38  ;;  %1601 = vmatpush1.bf16.msra.mxu1 %v2032_v50  ;;  %v287_v38 = vsub.s32 7, %v2387_v5 }
 0x3ce   :  { %1520 = vmatprep.subr.bf16.mxu0 %v2007_v39  ;;  %1602 = vmatprep.subr.bf16.mxu1 %v2040_v54  ;;  %v2067_v39 = vld [vmem:[#allocation6 + $0x144] ss:$8 sps:$4 sm:$0xff]   ;;  %v2071_v54 = vld [vmem:[#allocation6 + $0x150] ss:$8 sps:$4 sm:$0xff]  }
 0x3d1   :  { %1521 = vmatpush1.bf16.msra.mxu0 %v2005_v40  ;;  %1603 = vmatpush1.bf16.msra.mxu1 %v2038_v53  ;;  %v276_v40 = vrot.slane %v2395_v7, %v275_v36  ;;  %v2119_v36 = vld [vmem:[#allocation6 + $0x1d0] ss:$8 sps:$4 sm:$0xff]  }
 0x3d2   :  { %1522 = vmatprep.subr.bf16.mxu0 %v2013_v41  ;;  %1604 = vmatprep.subr.bf16.mxu1 %v2046_v57  ;;  %v280_v41 = vrot.slane %v2395_v7, %v279_v3  ;;  %v2124_v3 = vld [vmem:[#allocation6 + $0x384] ss:$8 sps:$4 sm:$0xff]  }
 0x3d5   :  { %1523 = vmatpush1.bf16.msra.mxu0 %v2011_v42  ;;  %1605 = vmatpush1.bf16.msra.mxu1 %v2044_v56  ;;  %v288_v42 = vrot.slane %v2395_v7, %v287_v38  ;;  %v2127_v38 = vld [vmem:[#allocation6 + $0x1e4] ss:$8 sps:$4 sm:$0xff]  }
 0x3d6   :  { %1524 = vmatprep.subr.bf16.mxu0 %v2019_v43  ;;  %1606 = vmatprep.subr.bf16.mxu1 %v2052_v59  ;;  %v2065_v43 = vld [vmem:[#allocation6 + $0x140] ss:$8 sps:$4 sm:$0xff]  }
 0x3d9   :  { %1525 = vmatpush1.bf16.msra.mxu0 %v2017_v44  ;;  %1607 = vmatpush1.bf16.msra.mxu1 %v2050_v58  ;;  %v2073_v44 = vld [vmem:[#allocation6 + $0x154] ss:$8 sps:$4 sm:$0xff]   ;;  %v2079_v58 = vld [vmem:[#allocation6 + $0x164] ss:$8 sps:$4 sm:$0xff]  }
 0x3da   :  { %1526 = vmatprep.subr.bf16.mxu0 %v2025_v45  ;;  %1608 = vmatprep.subr.bf16.mxu1 %v2058_v61 }
 0x3dd   :  { %1527 = vmatpush1.bf16.msra.mxu0 %v2023_v46  ;;  %1609 = vmatpush1.bf16.msra.mxu1 %v2056_v60 }
 0x3de   :  { %1528 = vmatprep.subr.bf16.mxu0 %v2031_v47  ;;  %1610 = vmatprep.subr.bf16.mxu1 %v2064_v62  ;;  %v2074_v62 = vld [vmem:[#allocation6 + $0x300] ss:$8 sps:$4 sm:$0xff]  }
 0x3e1   :  { %1529 = vmatpush1.bf16.msra.mxu0 %v2029_v48  ;;  %1611 = vmatpush1.bf16.msra.mxu1 %v2062_v63  ;;  %v2077_v63 = vld [vmem:[#allocation6 + $0x160] ss:$8 sps:$4 sm:$0xff]  }
 0x3e2   :  { %1530 = vmatprep.subr.bf16.mxu0 %v2037_v51  ;;  %1612 = vmatprep.subr.bf16.mxu1 %v2070_v0 }
 0x3e5   :  { %1531 = vmatpush1.bf16.msra.mxu0 %v2035_v52  ;;  %1613 = vmatpush1.bf16.msra.mxu1 %v2068_v1  ;;  %v2082_v1 = vld [vmem:[#allocation6 + $0x314] ss:$8 sps:$4 sm:$0xff]  }
 0x3e6   :  { %1541 = vmatprep.subr.bf16.mxu0 %v2043_v55  ;;  %1623 = vmatprep.subr.bf16.mxu1 %v2076_v2  ;;  %v2085_v2 = vld [vmem:[#allocation6 + $0x174] ss:$8 sps:$4 sm:$0xff]  }
 0x463   :  { %v574_v13 = vpop.f32.mrb[4].mxu1  ;;  %v2406_v14 = vpop.f32.mrb[4].mxu0 }
 0x464   :  { %v575_v15 = vadd.f32 %v574_v13, %v260_v10  ;;  %v576_v16 = vpop.f32.mrb[5].mxu1  ;;  %v617_v17 = vpop.f32.mrb[5].mxu0  ;;  %v2083_v10 = vld [vmem:[#allocation6 + $0x170] ss:$8 sps:$4 sm:$0xff]   ;;  %v2086_v13 = vld [vmem:[#allocation6 + $0x320] ss:$8 sps:$4 sm:$0xff]  }
 0x465   :  { %v577_v18 = vadd.f32 %v576_v16, %v264_v11  ;;  %v618_v19 = vadd.f32 %v617_v17, %v272_v12  ;;  %v578_v20 = vpop.f32.mrb[6].mxu1  ;;  %v619_v21 = vpop.f32.mrb[6].mxu0  ;;  %v2088_v11 = vld [vmem:[#allocation6 + $0x324] ss:$8 sps:$4 sm:$0xff]   ;;  %v2094_v16 = vld [vmem:[#allocation6 + $0x334] ss:$8 sps:$4 sm:$0xff]  }
 0x466   :  { %v704_v22 = vmax.f32 %v575_v15, 0.0  ;;  %v579_v23 = vpop.f32.mrb[7].mxu1  ;;  %v620_v24 = vpop.f32.mrb[7].mxu0  ;;  %v2091_v12 = vld [vmem:[#allocation6 + $0x184] ss:$8 sps:$4 sm:$0xff]  }
 0x467   :  { %v705_v25 = vmax.f32 %v577_v18, 0.0  ;;  %v707_v26 = vmax.f32 %v618_v19, 0.0  ;;  %v2089_v15 = vld [vmem:[#allocation6 + $0x180] ss:$8 sps:$4 sm:$0xff]   ;;  %v2097_v17 = vld [vmem:[#allocation6 + $0x194] ss:$8 sps:$4 sm:$0xff]  }
 0x468   :  { %v712_v29 = vpack.c.bf16 %v704_v22, %v704_v22  ;;  %v2092_v18 = vld [vmem:[#allocation6 + $0x330] ss:$8 sps:$4 sm:$0xff]   ;;  %v2100_v20 = vld [vmem:[#allocation6 + $0x344] ss:$8 sps:$4 sm:$0xff]   ;;  %v2098_v22 = vld [vmem:[#allocation6 + $0x340] ss:$8 sps:$4 sm:$0xff]  }
 0x469   :  { %v713_v27 = vpack.c.bf16 %v705_v25, %v705_v25  ;;  %v715_v31 = vpack.c.bf16 %v707_v26, %v707_v26  ;;  %v2095_v19 = vld [vmem:[#allocation6 + $0x190] ss:$8 sps:$4 sm:$0xff]   ;;  %v2103_v21 = vld [vmem:[#allocation6 + $0x1a4] ss:$8 sps:$4 sm:$0xff]   ;;  %v2101_v23 = vld [vmem:[#allocation6 + $0x1a0] ss:$8 sps:$4 sm:$0xff]  }
 0x46a   :  { %v2106_v24 = vld [vmem:[#allocation6 + $0x354] ss:$8 sps:$4 sm:$0xff]   ;;  %v2104_v26 = vld [vmem:[#allocation6 + $0x350] ss:$8 sps:$4 sm:$0xff]  }
 0x46b   :  { %1532 = vmatprep.mubr.bf16.mxu0 %v713_v27  ;;  %v2109_v25 = vld [vmem:[#allocation6 + $0x1b4] ss:$8 sps:$4 sm:$0xff]   ;;  %v2107_v27 = vld [vmem:[#allocation6 + $0x1b0] ss:$8 sps:$4 sm:$0xff]  }
 0x46c   :  { %1533 = vmatmul.mubr.bf16.vlgmr.msra.gmra.mrb[12].mxu0 %v712_v29  ;;  %v2115_v29 = vld [vmem:[#allocation6 + $0x1c4] ss:$8 sps:$4 sm:$0xff]  }
 0x46d   :  { %1542 = vmatpush1.bf16.msra.mxu0 %v2041_v28  ;;  %1573 = vmatprep.mubr.bf16.mxu0 %v715_v31  ;;  %v2112_v28 = vld [vmem:[#allocation6 + $0x364] ss:$8 sps:$4 sm:$0xff]   ;;  %v2113_v31 = vld [vmem:[#allocation6 + $0x1c0] ss:$8 sps:$4 sm:$0xff]  }
 0x46e   :  { %1543 = vmatprep.subr.bf16.mxu0 %v2049_v30  ;;  %v2110_v30 = vld [vmem:[#allocation6 + $0x360] ss:$8 sps:$4 sm:$0xff]  }
 0x471   :  { %1544 = vmatpush1.bf16.msra.mxu0 %v2047_v32  ;;  %v267_v32 = vsub.s32 2, %v2387_v5 }
 0x472   :  { %1545 = vmatprep.subr.bf16.mxu0 %v2055_v33  ;;  %v2118_v33 = vld [vmem:[#allocation6 + $0x374] ss:$8 sps:$4 sm:$0xff]  }
 0x475   :  { %1546 = vmatpush1.bf16.msra.mxu0 %v2053_v34  ;;  %v2121_v34 = vld [vmem:[#allocation6 + $0x1d4] ss:$8 sps:$4 sm:$0xff]  }
 0x476   :  { %1547 = vmatprep.subr.bf16.mxu0 %v2061_v35  ;;  %v2116_v35 = vld [vmem:[#allocation6 + $0x370] ss:$8 sps:$4 sm:$0xff]  }
 0x479   :  { %1548 = vmatpush1.bf16.msra.mxu0 %v2059_v37  ;;  %v268_v37 = vrot.slane %v2395_v7, %v267_v32 }
 0x47a   :  { %1549 = vmatprep.subr.bf16.mxu0 %v2067_v39  ;;  %v2122_v39 = vld [vmem:[#allocation6 + $0x380] ss:$8 sps:$4 sm:$0xff]  }
 0x47b   :  { %v656_v45 = vpop.f32.mrb[8].mxu1  ;;  %v2414_v46 = vpop.f32.mrb[8].mxu0 }
 0x47c   :  { %v657_v47 = vadd.f32 %v656_v45, %v276_v40  ;;  %v658_v48 = vpop.f32.mrb[9].mxu1  ;;  %v699_v49 = vpop.f32.mrb[9].mxu0  ;;  %v2125_v40 = vld [vmem:[#allocation6 + $0x1e0] ss:$8 sps:$4 sm:$0xff]   ;;  %v2131_v45 = vld [vmem:[#allocation6 + $0x1f0] ss:$8 sps:$4 sm:$0xff]  }
 0x47d   :  { %v659_v50 = vadd.f32 %v658_v48, %v280_v41  ;;  %v700_v51 = vadd.f32 %v699_v49, %v288_v42  ;;  %v660_v52 = vpop.f32.mrb[10].mxu1  ;;  %v701_v53 = vpop.f32.mrb[10].mxu0  ;;  %1550 = vmatpush1.bf16.msra.mxu0 %v2065_v43  ;;  %v616_v41 = vadd.f32 %v2406_v14, %v268_v37  ;;  %v2130_v42 = vld [vmem:[#allocation6 + $0x394] ss:$8 sps:$4 sm:$0xff]   ;;  %v2136_v48 = vld [vmem:[#allocation6 + $0x3a4] ss:$8 sps:$4 sm:$0xff]  }
 0x47e   :  { %v708_v55 = vmax.f32 %v657_v47, 0.0  ;;  %v661_v56 = vpop.f32.mrb[11].mxu1  ;;  %v702_v57 = vpop.f32.mrb[11].mxu0  ;;  %1551 = vmatprep.subr.bf16.mxu0 %v2073_v44  ;;  %v2133_v43 = vld [vmem:[#allocation6 + $0x1f4] ss:$8 sps:$4 sm:$0xff]  }
 0x47f   :  { %v709_v59 = vmax.f32 %v659_v50, 0.0  ;;  %v711_v60 = vmax.f32 %v700_v51, 0.0  ;;  %v2128_v44 = vld [vmem:[#allocation6 + $0x390] ss:$8 sps:$4 sm:$0xff]   ;;  %v706_v47 = vmax.f32 %v616_v41, 0.0 }
 0x480   :  { %v716_v0 = vpack.c.bf16 %v708_v55, %v708_v55  ;;  %v2134_v49 = vld [vmem:[#allocation6 + $0x3a0] ss:$8 sps:$4 sm:$0xff]   ;;  %v2139_v51 = vld [vmem:[#allocation6 + $0x3b4] ss:$8 sps:$4 sm:$0xff]   ;;  %v2137_v14 = vld [vmem:[#allocation6 + $0x3b0] ss:$8 sps:$4 sm:$0xff]  }
 0x481   :  { %v717_v61 = vpack.c.bf16 %v709_v59, %v709_v59  ;;  %1552 = vmatpush1.bf16.msra.mxu0 %v2071_v54  ;;  %v719_v4 = vpack.c.bf16 %v711_v60, %v711_v60  ;;  %v714_v50 = vpack.c.bf16 %v706_v47, %v706_v47  ;;  %v2142_v52 = vld [vmem:[#allocation6 + $0x3c4] ss:$8 sps:$4 sm:$0xff]   ;;  %v2140_v53 = vld [vmem:[#allocation6 + $0x3c0] ss:$8 sps:$4 sm:$0xff]   ;;  %v283_v54 = vsub.s32 6, %v2387_v5 }
 0x482   :  { %1553 = vmatprep.subr.bf16.mxu0 %v2079_v58  ;;  %v2145_v55 = vld [vmem:[#allocation6 + $0x3d4] ss:$8 sps:$4 sm:$0xff]   ;;  %v2143_v56 = vld [vmem:[#allocation6 + $0x3d0] ss:$8 sps:$4 sm:$0xff]   ;;  %v2148_v58 = vld [vmem:[#allocation6 + $0x3e4] ss:$8 sps:$4 sm:$0xff]  }
 0x483   :  { %1614 = vmatprep.mubr.bf16.mxu1 %v717_v61  ;;  %v284_v57 = vrot.slane %v2395_v7, %v283_v54  ;;  %v2146_v59 = vld [vmem:[#allocation6 + $0x3e0] ss:$8 sps:$4 sm:$0xff]   ;;  %v2151_v61 = vld [vmem:[#allocation6 + $0x3f4] ss:$8 sps:$4 sm:$0xff]  }
 0x484   :  { %1615 = vmatmul.mubr.bf16.vlgmr.msra.gmra.mrb[12].mxu1 %v716_v0  ;;  %v848_v7 = vld [vmem:[%s2468_s6] sm:$0x3]  ;;  %s2266_s6 = smov [#allocation8]  }
 0x485   :  { %1624 = vmatpush1.bf16.msra.mxu1 %v2074_v62  ;;  %1554 = vmatpush1.bf16.msra.mxu0 %v2077_v63  ;;  %v698_v60 = vadd.f32 %v2414_v46, %v284_v57  ;;  %v2149_v62 = vld [vmem:[#allocation6 + $0x3f0] ss:$8 sps:$4 sm:$0xff]   ;;  %v857_v46 = vrot.slane %v848_v7, %v2398_v8 }
 0x486   :  { %1655 = vmatprep.mubr.bf16.mxu1 %v719_v4  ;;  %1625 = vmatprep.subr.bf16.mxu1 %v2082_v1 }
 0x487   :  { %1555 = vmatprep.subr.bf16.mxu0 %v2085_v2  ;;  %v710_v63 = vmax.f32 %v698_v60, 0.0 }
 0x489   :  { %1626 = vmatpush1.bf16.msra.mxu1 %v2080_v9  ;;  %1556 = vmatpush1.bf16.msra.mxu0 %v2083_v10  ;;  %v718_v5 = vpack.c.bf16 %v710_v63, %v710_v63  ;;  %v853_v9 = vrot.slane %v848_v7, %v2390_v6  ;;  %v1666_v10 = vld [vmem:[%s2469_s7] sm:$0x3]  ;;  %s1703_s7 = sshll.u32 %s2266_s6, 4  ;;  %s1704_s7 = int_to_ptr.vmem [resolvable:$true] %s1703_s7 }
 0x48a   :  { %1627 = vmatprep.subr.bf16.mxu1 %v2088_v11  ;;  %1557 = vmatprep.subr.bf16.mxu0 %v2091_v12  ;;  %s2204_s19 = scalar_lea.vmem %s1704_s7, 64  ;;  %p2209_p3 = scmp.lt.s32.totalorder %s1704_s7, %s1704_s7 }
 0x48b   :  { %p2205_p2 = scmp.ne.s32.totalorder %s1704_s7, %s2204_s19  ;;  %p2210_p4 = scmp.lt.s32.totalorder %s2204_s19, %s2204_s19 }
 0x48d   :  { %1628 = vmatpush1.bf16.msra.mxu1 %v2086_v13  ;;  %1558 = vmatpush1.bf16.msra.mxu0 %v2089_v15  ;;  %p2211_p5 = por %p2210_p4, %p2209_p3 }
 0x48e   :  { %1629 = vmatprep.subr.bf16.mxu1 %v2094_v16  ;;  %1559 = vmatprep.subr.bf16.mxu0 %v2097_v17  ;;  %v1671_v16 = vrot.slane %v1666_v10, %v2390_v6 }
 0x48f   :  { %p2212_p6 = pnand %p2211_p5, %p2205_p2 }
 0x491   :  { %1630 = vmatpush1.bf16.msra.mxu1 %v2092_v18  ;;  %1560 = vmatpush1.bf16.msra.mxu0 %v2095_v19  ;;  %v1675_v19 = vrot.slane %v1666_v10, %v2398_v8 }
 0x492   :  { %1631 = vmatprep.subr.bf16.mxu1 %v2100_v20  ;;  %1561 = vmatprep.subr.bf16.mxu0 %v2103_v21 }
 0x495   :  { %1632 = vmatpush1.bf16.msra.mxu1 %v2098_v22  ;;  %1562 = vmatpush1.bf16.msra.mxu0 %v2101_v23 }
 0x496   :  { %1633 = vmatprep.subr.bf16.mxu1 %v2106_v24  ;;  %1563 = vmatprep.subr.bf16.mxu0 %v2109_v25 }
 0x499   :  { %1634 = vmatpush1.bf16.msra.mxu1 %v2104_v26  ;;  %1564 = vmatpush1.bf16.msra.mxu0 %v2107_v27 }
 0x49a   :  { %1635 = vmatprep.subr.bf16.mxu1 %v2112_v28  ;;  %1565 = vmatprep.subr.bf16.mxu0 %v2115_v29 }
 0x49d   :  { %1636 = vmatpush1.bf16.msra.mxu1 %v2110_v30  ;;  %1566 = vmatpush1.bf16.msra.mxu0 %v2113_v31 }
 0x49e   :  { %1637 = vmatprep.subr.bf16.mxu1 %v2118_v33  ;;  %1567 = vmatprep.subr.bf16.mxu0 %v2121_v34 }
 0x4a1   :  { %1638 = vmatpush1.bf16.msra.mxu1 %v2116_v35  ;;  %1568 = vmatpush1.bf16.msra.mxu0 %v2119_v36 }
 0x4a2   :  { %1639 = vmatprep.subr.bf16.mxu1 %v2124_v3  ;;  %1569 = vmatprep.subr.bf16.mxu0 %v2127_v38 }
 0x4a5   :  { %1640 = vmatpush1.bf16.msra.mxu1 %v2122_v39  ;;  %1570 = vmatpush1.bf16.msra.mxu0 %v2125_v40 }
 0x4a6   :  { %1641 = vmatprep.subr.bf16.mxu1 %v2130_v42  ;;  %1571 = vmatprep.subr.bf16.mxu0 %v2133_v43 }
 0x4a9   :  { %1642 = vmatpush1.bf16.msra.mxu1 %v2128_v44  ;;  %1572 = vmatpush1.bf16.msra.mxu0 %v2131_v45 }
 0x4aa   :  { %1643 = vmatprep.subr.bf16.mxu1 %v2136_v48 }
 0x4ac   :  { %1574 = vmatmul.mubr.bf16.vlgmr.msra.gmra.mrb[12].mxu0 %v714_v50 }
 0x4ad   :  { %1644 = vmatpush1.bf16.msra.mxu1 %v2134_v49 }
 0x4ae   :  { %1645 = vmatprep.subr.bf16.mxu1 %v2139_v51 }
 0x4b1   :  { %1646 = vmatpush1.bf16.msra.mxu1 %v2137_v14 }
 0x4b2   :  { %1647 = vmatprep.subr.bf16.mxu1 %v2142_v52 }
 0x4b5   :  { %1648 = vmatpush1.bf16.msra.mxu1 %v2140_v53 }
 0x4b6   :  { %1649 = vmatprep.subr.bf16.mxu1 %v2145_v55 }
 0x4b9   :  { %1650 = vmatpush1.bf16.msra.mxu1 %v2143_v56 }
 0x4ba   :  { %1651 = vmatprep.subr.bf16.mxu1 %v2148_v58 }
 0x4bd   :  { %1652 = vmatpush1.bf16.msra.mxu1 %v2146_v59 }
 0x4be   :  { %1653 = vmatprep.subr.bf16.mxu1 %v2151_v61 }
 0x4c1   :  { %1654 = vmatpush1.bf16.msra.mxu1 %v2149_v62 }
 0x4c4   :  { %1656 = vmatmul.mubr.bf16.vlgmr.msra.gmra.mrb[12].mxu1 %v718_v5 }
 0x57f   :  { %v1575_v0 = vpop.f32.mrb[12].mxu0 }
 0x580   :  { %v1577_v1 = vpop.f32.mrb[13].mxu0  ;;  %v1934_v11 = vadd.f32 %v1575_v0, %v853_v9 }
 0x581   :  { %v1579_v2 = vpop.f32.mrb[14].mxu0  ;;  %v1936_v12 = vadd.f32 %v1577_v1, %v857_v46 }
 0x582   :  { %v1580_v4 = vpop.f32.mrb[15].mxu0 }
 0x597   :  { %v1657_v13 = vpop.f32.mrb[12].mxu1 }
 0x598   :  { %v1935_v15 = vadd.f32 %v1934_v11, %v1657_v13  ;;  %v1659_v17 = vpop.f32.mrb[13].mxu1 }
 0x599   :  { %v1937_v18 = vadd.f32 %v1936_v12, %v1659_v17  ;;  %v1661_v20 = vpop.f32.mrb[14].mxu1 }
 0x59a   :  { %v1664_v21 = vmax.f32 %v1935_v15, 0.0  ;;  %v1662_v22 = vpop.f32.mrb[15].mxu1 }
 0x59b   :  { %v1665_v23 = vmax.f32 %v1937_v18, 0.0 }
 0x59c   :  { %v1678_v24 = vmul.f32 %v1671_v16, %v1664_v21 }
 0x59d   :  { %v1679_v25 = vmul.f32 %v1675_v19, %v1665_v23 }
 0x59f   :  { %v1680_v26 = vadd.f32 %v1679_v25, %v1678_v24 }
 0x5a1   :  { %1681 = vadd.xlane.f32.xlu0 %v1680_v26 }
 0x5a2   :  { %2215 = shalt.err (!%p2212_p6)
}
 0x5a3   :  { %s2216_s22 = scalar_lea.hbm %s2471_s9, 64 }
 0x5a4   :  { %p2217_p7 = scmp.ne.s32.totalorder %s2471_s9, %s2216_s22  ;;  %p2220_p8 = scmp.lt.u32.totalorder %s2216_s22, %s2471_s9 }
 0x5a6   :  { %p2222_p9 = pnand %p2220_p8, %p2217_p7 }
 0x5a8   :  { %2225 = shalt.err (!%p2222_p9)
}
 0x5a9   :  { %1706 = dma.vmem_to_hbm [thread:$0]  %s1704_s7, 64, %s2471_s9, [#allocation5]  }
 0x5aa   :  { %s2226_s27 = scalar_lea.vmem %s1714_s17, 128  ;;  %p2231_p11 = scmp.lt.s32.totalorder %s1714_s17, %s1714_s17 }
 0x5ab   :  { %p2227_p10 = scmp.ne.s32.totalorder %s1714_s17, %s2226_s27  ;;  %p2232_p12 = scmp.lt.s32.totalorder %s2226_s27, %s2226_s27 }
 0x5ad   :  { %p2233_p13 = por %p2232_p12, %p2231_p11 }
 0x5af   :  { %p2234_p0 = pnand %p2233_p13, %p2227_p10 }
 0x5b1   :  { %2237 = shalt.err (!%p2234_p0)
}
 0x5b2   :  { %s2238_s30 = scalar_lea.hbm %s2472_s10, 128 }
 0x5b3   :  { %p2239_p1 = scmp.ne.s32.totalorder %s2472_s10, %s2238_s30  ;;  %p2242_p2 = scmp.lt.u32.totalorder %s2238_s30, %s2472_s10 }
 0x5b5   :  { %p2244_p3 = pnand %p2242_p2, %p2239_p1 }
 0x5b7   :  { %2247 = shalt.err (!%p2244_p3)
}
 0x5b8   :  { %1716 = dma.vmem_to_hbm [thread:$0]  %s1714_s17, 128, %s2472_s10, [#allocation10]   ;;  %v1684_v6 = vstv %s2470_s8  ;;  %vm1695_vm8 = vcmask 7168  }
 0x62e   :  { %v1682_v8 = vpop.xlane.xlu0 %1681 }
 0x62f   :  { %v1685_v27 = vadd.f32 %v1684_v6, %v1682_v8 }
 0x631   :  { %vm1686_vm7 = vcmp.lt.f32.partialorder %v1685_v27, 0.0  ;;  %v1687_v28 = vsub.f32 0.0, %v1685_v27 }
 0x633   :  { %v1688_v29 = vsel %vm1686_vm7, %v1685_v27, %v1687_v28 }
 0x634   :  { %v1689_v30 = vmul.f32 1.442695, %v1688_v29 }
 0x636   :  { %2156 = vpow2.f32 %v1689_v30 }
 0x640   :  { %v2157_v31 = vpop.eup %2156 }
 0x641   :  { %v1691_v32 = vadd.f32 1.0, %v2157_v31 }
 0x643   :  { %2158 = vrcp.f32 %v1691_v32 }
 0x64d   :  { %v2159_v33 = vpop.eup %2158 }
 0x64e   :  { %v1693_v34 = vmul.f32 %v2159_v33, %v2157_v31 }
 0x650   :  { %v1694_v35 = vsel %vm1686_vm7, %v1693_v34, %v2159_v33 }
 0x651   :  { %1696 = vst.msk [vmem:[%s2473_s11] sm:$0xff] %vm1695_vm8, %v1694_v35 }
 0x652   :  { %2252 = dma.done.wait [#allocation5], 64  }
 0x653   :  { %2253 = vsyncadd [#allocation5], 4294967232 }
 0x654   :  { %2254 = dma.done.wait [#allocation10], 128  }
 0x655   :  { %2255 = vsyncadd [#allocation10], 4294967168 }
 0x656   :  { %1727 = vsyncpa [#allocation4], 1 }
 0x657   :  { %1728 = vsyncpa [#allocation7], 1 }
 0x658   :  { %1729 = vsyncpa [#allocation5], 1 }
 0x659   :  { %1730 = vsyncpa [#allocation10], 1 }

</bundles_post_ra>
